<compile_context>
chip_gen: v6e
topology: v6e:2x2x1
jax: 0.10.0
libtpu: 0.0.40
codegen_flags: <defaults>
</compile_context>

<pallas_src>
import functools

import jax
import jax.numpy as jnp
from jax.experimental import pallas as pl
from jax.experimental.pallas import tpu as pltpu


def _round_up(v: int, mult: int) -> int:
    return ((v + mult - 1) // mult) * mult


def _norm_linear_kernel(x_ref, w_ref, nw_ref, *rest, eps: float, inv_d: float,
                        has_bias: bool):
    # x_ref : (TM, D_in)    tile of the flattened input
    # w_ref : (TN, D_in)    tile of the linear weight (PyTorch layout)
    # nw_ref: (1, D_in)     RMSNorm scale
    # b_ref : (1, TN)       linear bias tile (only if has_bias)
    # o_ref : (TM, TN)      output tile
    # xn_ref: (TM, D_in)    VMEM scratch: normalized x, pre-cast to compute dtype
    if has_bias:
        b_ref, o_ref, xn_ref = rest
    else:
        o_ref, xn_ref = rest

    # Compute RMSNorm once per row tile (j == 0), reuse for all d_out tiles.
    @pl.when(pl.program_id(1) == 0)
    def _():
        x = x_ref[...].astype(jnp.float32)            # (TM, D_in)
        nw = nw_ref[...].astype(jnp.float32)          # (1, D_in), row-broadcast
        ms = jnp.sum(x * x, axis=-1, keepdims=True) * inv_d   # (TM, 1)
        x_norm = x * jax.lax.rsqrt(ms + eps) * nw
        xn_ref[...] = x_norm.astype(xn_ref.dtype)

    # (TM, D_in) . (TN, D_in)^T -> (TM, TN), f32 accumulation on the MXU.
    out = jax.lax.dot_general(
        xn_ref[...], w_ref[...].astype(xn_ref.dtype),
        dimension_numbers=(((1,), (1,)), ((), ())),
        preferred_element_type=jnp.float32,
    )
    if has_bias:
        out = out + b_ref[...].astype(jnp.float32)

    o_ref[...] = out.astype(o_ref.dtype)


def norm_linear(x, weight, bias, norm_weight, eps: float = 1e-5,
                *, tm: int = 256, tn: int = 512, compute_dtype=None):
    """Fused RMSNorm + Linear.

    x:           (..., in_features)
    weight:      (out_features, in_features)   -- PyTorch nn.Linear convention
    bias:        (out_features,) or None
    norm_weight: (in_features,)
    compute_dtype: optional dtype for the matmul operands (e.g. jnp.bfloat16
                   to run the MXU in bf16 for f32 checkpoints). Defaults to
                   the weight dtype. Accumulation is always f32.
    """
    orig_shape = x.shape
    d_in = orig_shape[-1]
    d_out = weight.shape[0]
    has_bias = bias is not None
    compute_dtype = jnp.dtype(compute_dtype or weight.dtype)

    x2d = x.reshape(-1, d_in)
    m = x2d.shape[0]

    # ---- initial tile sizes ----
    tm = _round_up(max(tm, 16), 16)
    m_pad16 = _round_up(m, 16)
    tm_eff = min(tm, m_pad16)

    tn = _round_up(max(tn, 128), 128)
    d_out_128 = _round_up(d_out, 128)
    tn_eff = min(tn, d_out_128)

    # ---- VMEM budget, clamped to the actual chip capacity ----
    x_b = x2d.dtype.itemsize
    w_b = weight.dtype.itemsize
    nw_b = norm_weight.dtype.itemsize
    b_b = bias.dtype.itemsize if has_bias else 0
    o_b = x.dtype.itemsize
    c_b = compute_dtype.itemsize

    def _need(tm_, tn_):
        n = 2 * (tm_ * d_in * x_b            # x (double-buffered)
                 + tn_ * d_in * w_b          # weight (double-buffered)
                 + d_in * nw_b               # norm weight
                 + (tn_ * b_b if has_bias else 0)
                 + tm_ * tn_ * o_b)          # output
        n += tm_ * d_in * c_b                # x_norm scratch (single buffer)
        n += 3 * tm_ * d_in * 4 + 2 * tm_ * tn_ * 4   # f32 temporaries
        return n

    try:
        vmem_cap = int(pltpu.get_tpu_info().vmem_capacity_bytes)
    except Exception:
        vmem_cap = 64 << 20   # conservative (v7x per-core VMEM)
    cap = max(vmem_cap - (12 << 20), 16 << 20)

    # Auto-shrink tiles until the footprint fits (tn first, then tm).
    while _need(tm_eff, tn_eff) > cap:
        if tn_eff > 128:
            tn_eff = max(128, _round_up(tn_eff // 2, 128))
        elif tm_eff > 16:
            tm_eff = max(16, _round_up(tm_eff // 2, 16))
        else:
            break

    vmem_limit = int(min(cap, max(_need(tm_eff, tn_eff) + (8 << 20), 32 << 20)))

    # ---- padding ----
    m_pad = _round_up(m, tm_eff)
    if m_pad != m:
        x2d = jnp.pad(x2d, ((0, m_pad - m), (0, 0)))

    n_pad = _round_up(d_out, tn_eff)         # tn_eff is a multiple of 128
    w_pad = weight
    if n_pad != d_out:
        w_pad = jnp.pad(weight, ((0, n_pad - d_out), (0, 0)))
    nw = norm_weight.reshape(1, d_in)

    inputs = [x2d, w_pad, nw]
    in_specs = [
        pl.BlockSpec((tm_eff, d_in), lambda i, j: (i, 0)),   # x tile
        pl.BlockSpec((tn_eff, d_in), lambda i, j: (j, 0)),   # weight tile
        pl.BlockSpec((1, d_in), lambda i, j: (0, 0)),        # norm weight
    ]
    if has_bias:
        b_pad = bias
        if n_pad != d_out:
            b_pad = jnp.pad(bias, (0, n_pad - d_out))
        inputs.append(b_pad.reshape(1, n_pad))
        in_specs.append(pl.BlockSpec((1, tn_eff), lambda i, j: (0, j)))

    grid = (m_pad // tm_eff, n_pad // tn_eff)

    out2d = pl.pallas_call(
        functools.partial(_norm_linear_kernel, eps=float(eps),
                          inv_d=1.0 / float(d_in), has_bias=has_bias),
        out_shape=jax.ShapeDtypeStruct((m_pad, n_pad), x.dtype),
        grid_spec=pltpu.PrefetchScalarGridSpec(
            num_scalar_prefetch=0,
            grid=grid,
            in_specs=in_specs,
            out_specs=pl.BlockSpec((tm_eff, tn_eff), lambda i, j: (i, j)),
            scratch_shapes=[pltpu.VMEM((tm_eff, d_in), compute_dtype)],
        ),
        compiler_params=pltpu.CompilerParams(
            # j (d_out) must iterate sequentially so the cached x_norm scratch
            # is valid; i stays parallel for megacore sharding on v7x.
            dimension_semantics=("parallel", "arbitrary"),
            vmem_limit_bytes=vmem_limit,
        ),
    )(*inputs)

    out2d = out2d[:m, :d_out]
    return out2d.reshape(*orig_shape[:-1], d_out)


def _reference(x, weight, bias, norm_weight, eps):
    x32 = x.astype(jnp.float32)
    ms = jnp.mean(x32 * x32, axis=-1, keepdims=True)
    xn = x32 * jax.lax.rsqrt(ms + eps) * norm_weight.astype(jnp.float32)
    out = xn @ weight.astype(jnp.float32).T
    if bias is not None:
        out = out + bias.astype(jnp.float32)
    return out.astype(x.dtype)


if __name__ == "__main__":
    key = jax.random.PRNGKey(0)
    k_x, k_w, k_b = jax.random.split(key, 3)

    batch, seq, in_features, out_features = 2, 8, 32, 64
    eps = 1e-5

    x = jax.random.normal(k_x, (batch, seq, in_features), dtype=jnp.float32)
    # deterministic synthetic params: trunc_normal-ish weight, small bias
    weight = 0.02 * jax.random.truncated_normal(
        k_w, -2.0, 2.0, (out_features, in_features), dtype=jnp.float32)
    bias = 0.01 * jax.random.normal(k_b, (out_features,), dtype=jnp.float32)
    norm_weight = jnp.ones((in_features,), dtype=jnp.float32)  # nn.RMSNorm init

    # ---- f32, with bias ----
    out = norm_linear(x, weight, bias, norm_weight, eps)
    out = jax.block_until_ready(out)
    ref = _reference(x, weight, bias, norm_weight, eps)
    assert out.shape == (batch, seq, out_features), out.shape
    assert jnp.allclose(out, ref, atol=1e-4, rtol=1e-4), \
        float(jnp.max(jnp.abs(out - ref)))

    # ---- f32, bias=None (statically specialized path) ----
    out_nb = norm_linear(x, weight, None, norm_weight, eps)
    out_nb = jax.block_until_ready(out_nb)
    ref_nb = _reference(x, weight, None, norm_weight, eps)
    assert jnp.allclose(out_nb, ref_nb, atol=1e-4, rtol=1e-4), \
        float(jnp.max(jnp.abs(out_nb - ref_nb)))

    # ---- bf16 weights/activations (matmul in bf16, f32 accumulation) ----
    x_bf = x.astype(jnp.bfloat16)
    w_bf = weight.astype(jnp.bfloat16)
    b_bf = bias.astype(jnp.bfloat16)
    nw_bf = norm_weight.astype(jnp.bfloat16)
    out_bf = norm_linear(x_bf, w_bf, b_bf, nw_bf, eps)
    out_bf = jax.block_until_ready(out_bf)
    ref_bf = _reference(x_bf, w_bf, b_bf, nw_bf, eps)
    assert out_bf.dtype == jnp.bfloat16
    assert jnp.allclose(out_bf.astype(jnp.float32), ref_bf.astype(jnp.float32),
                        atol=3e-2, rtol=3e-2), \
        float(jnp.max(jnp.abs(out_bf.astype(jnp.float32)
                              - ref_bf.astype(jnp.float32))))

    print("KERNEL_OK")
</pallas_src>

<mosaic_0001>
module attributes {stable_mosaic.version = 11 : i64} {
  func.func @_norm_linear_kernel(%arg0: i32, %arg1: i32, %arg2: memref<16x32xf32, #tpu.memory_space<vmem>>, %arg3: memref<128x32xf32, #tpu.memory_space<vmem>>, %arg4: memref<1x32xf32, #tpu.memory_space<vmem>>, %arg5: memref<1x128xf32, #tpu.memory_space<vmem>>, %arg6: memref<16x128xf32, #tpu.memory_space<vmem>>, %arg7: memref<16x32xf32, #tpu.memory_space<vmem>>) attributes {dimension_semantics = [#tpu.dimension_semantics<parallel>, #tpu.dimension_semantics<arbitrary>], iteration_bounds = array<i64: 1, 1>, scalar_prefetch = 0 : i64, scratch_operands = 1 : i64, tpu.core_type = #tpu.core_type<tc>, window_params = [{transform_indices = @transform_0, window_bounds = array<i64: 16, 32>}, {transform_indices = @transform_1, window_bounds = array<i64: 128, 32>}, {pipeline_mode = #tpu.pipeline_mode<synchronous>, transform_indices = @transform_2, window_bounds = array<i64: 1, 32>}, {transform_indices = @transform_3, window_bounds = array<i64: 1, 128>}, {transform_indices = @transform_4, window_bounds = array<i64: 16, 128>}]} {
    %c0_i32 = arith.constant 0 : i32
    %0 = arith.cmpi eq, %arg1, %c0_i32 : i32
    %1 = arith.extui %0 : i1 to i32
    %c0_i32_0 = arith.constant 0 : i32
    %2 = arith.cmpi ne, %1, %c0_i32_0 : i32
    scf.if %2 {
      %c0_8 = arith.constant 0 : index
      %c0_9 = arith.constant 0 : index
      %10 = vector.load %arg2[%c0_8, %c0_9] : memref<16x32xf32, #tpu.memory_space<vmem>>, vector<16x32xf32>
      %c0_10 = arith.constant 0 : index
      %c0_11 = arith.constant 0 : index
      %11 = vector.load %arg4[%c0_10, %c0_11] : memref<1x32xf32, #tpu.memory_space<vmem>>, vector<1x32xf32>
      %12 = arith.mulf %10, %10 : vector<16x32xf32>
      %cst_12 = arith.constant dense<0.000000e+00> : vector<16xf32>
      %13 = vector.multi_reduction <add>, %12, %cst_12 [1] : vector<16x32xf32> to vector<16xf32>
      %14 = vector.shape_cast %13 : vector<16xf32> to vector<16x1xf32>
      %cst_13 = arith.constant 3.125000e-02 : f32
      %15 = vector.broadcast %cst_13 : f32 to vector<16x1xf32>
      %16 = arith.mulf %14, %15 : vector<16x1xf32>
      %cst_14 = arith.constant 9.99999974E-6 : f32
      %17 = vector.broadcast %cst_14 : f32 to vector<16x1xf32>
      %18 = arith.addf %16, %17 : vector<16x1xf32>
      %19 = math.rsqrt %18 : vector<16x1xf32>
      %20 = vector.broadcast %19 : vector<16x1xf32> to vector<16x32xf32>
      %21 = arith.mulf %10, %20 : vector<16x32xf32>
      %22 = vector.broadcast %11 : vector<1x32xf32> to vector<16x32xf32>
      %23 = arith.mulf %21, %22 : vector<16x32xf32>
      %c0_15 = arith.constant 0 : index
      %c0_16 = arith.constant 0 : index
      %24 = vector.load %arg7[%c0_15, %c0_16] : memref<16x32xf32, #tpu.memory_space<vmem>>, vector<16x32xf32>
      tpu.vector_store %arg7[%c0_15, %c0_16], %23 {strides = array<i32>} : memref<16x32xf32, #tpu.memory_space<vmem>>, vector<16x32xf32>,
    } else {
    }
    %c0 = arith.constant 0 : index
    %c0_1 = arith.constant 0 : index
    %3 = vector.load %arg7[%c0, %c0_1] : memref<16x32xf32, #tpu.memory_space<vmem>>, vector<16x32xf32>
    %c0_2 = arith.constant 0 : index
    %c0_3 = arith.constant 0 : index
    %4 = vector.load %arg3[%c0_2, %c0_3] : memref<128x32xf32, #tpu.memory_space<vmem>>, vector<128x32xf32>
    %cst = arith.constant dense<0.000000e+00> : vector<16x128xf32>
    %5 = tpu.matmul %3, %4, %cst {dimension_numbers = #tpu.dot_dimension_numbers<[1], [1], [0], [0], [0, 0, 1, 0], [], []>} : vector<16x32xf32>, vector<128x32xf32>, vector<16x128xf32> -> vector<16x128xf32>
    %c0_4 = arith.constant 0 : index
    %c0_5 = arith.constant 0 : index
    %6 = vector.load %arg5[%c0_4, %c0_5] : memref<1x128xf32, #tpu.memory_space<vmem>>, vector<1x128xf32>
    %7 = vector.broadcast %6 : vector<1x128xf32> to vector<16x128xf32>
    %8 = arith.addf %5, %7 : vector<16x128xf32>
    %c0_6 = arith.constant 0 : index
    %c0_7 = arith.constant 0 : index
    %9 = vector.load %arg6[%c0_6, %c0_7] : memref<16x128xf32, #tpu.memory_space<vmem>>, vector<16x128xf32>
    tpu.vector_store %arg6[%c0_6, %c0_7], %8 {strides = array<i32>} : memref<16x128xf32, #tpu.memory_space<vmem>>, vector<16x128xf32>,
    return
  }
  func.func @transform_0(%arg0: i32, %arg1: i32) -> (i32, i32) {
    %c0_i32 = arith.constant 0 : i32
    %c0_i32_0 = arith.constant 0 : i32
    return %arg0, %c0_i32 : i32, i32
  }
  func.func @transform_1(%arg0: i32, %arg1: i32) -> (i32, i32) {
    %c0_i32 = arith.constant 0 : i32
    %c0_i32_0 = arith.constant 0 : i32
    return %arg1, %c0_i32 : i32, i32
  }
  func.func @transform_2(%arg0: i32, %arg1: i32) -> (i32, i32) {
    %c0_i32 = arith.constant 0 : i32
    %c0_i32_0 = arith.constant 0 : i32
    %c0_i32_1 = arith.constant 0 : i32
    return %c0_i32, %c0_i32_0 : i32, i32
  }
  func.func @transform_3(%arg0: i32, %arg1: i32) -> (i32, i32) {
    %c0_i32 = arith.constant 0 : i32
    %c0_i32_0 = arith.constant 0 : i32
    return %c0_i32, %arg1 : i32, i32
  }
  func.func @transform_4(%arg0: i32, %arg1: i32) -> (i32, i32) {
    %c0_i32 = arith.constant 0 : i32
    return %arg0, %arg1 : i32, i32
  }
}

</mosaic_0001>

<bundles_post_ra>
// kernel: tpu_custom_call.1
= control target key start
LH: loop header
LB: loop body
LE: loop exit
PB: predicated region body
PF: predicated region fallthrough
CT: control target
= control target key end

     0   :  { %vm27_vm0 = vcmask 261120   ;;  %s466_s0 = inlined_call_operand.vmem [shape: f32[16,32], index: 0, kind: input, shape index: {}]   ;;  %s467_s1 = inlined_call_operand.vmem [shape: f32[128,32], index: 1, kind: input, shape index: {}]   ;;  %s468_s2 = inlined_call_operand.vmem [shape: f32[1,32], index: 2, kind: input, shape index: {}]   ;;  %s469_s3 = inlined_call_operand.vmem [shape: f32[1,128], index: 3, kind: input, shape index: {}]   ;;  %s470_s4 = inlined_call_operand.hbm [shape: f32[16,128], index: 4, kind: output, shape index: {}]  }
   0x1   :  { %v358_v0 = vld [vmem:[%s466_s0] sm:$0xff]  ;;  %v363_v1 = vld [vmem:[%s466_s0 + $0x8] sm:$0xff]  ;;  %v69_v2 = vld [vmem:[%s467_s1 + $0x78] sm:$0xff] }
   0x2   :  { %v25_v3 = vmul.f32 %v358_v0, %v358_v0  ;;  %v26_v4 = vmul.f32 %v363_v1, %v363_v1  ;;  %263 = vmatprep.subr.msk.mxu0 %vm27_vm0, %v69_v2  ;;  %v68_v5 = vld [vmem:[%s467_s1 + $0x70] sm:$0xff]  ;;  %v67_v7 = vld [vmem:[%s467_s1 + $0x68] sm:$0xff] }
   0x3   :  { %264 = vmatpush3.xpose.msk.msra.mxu0 %vm27_vm0, %v69_v2 }
   0x4   :  { %v28_v6 = vsel %vm27_vm0, %v25_v3, 0.0  ;;  %265 = vmatprep.subr.msk.mxu0 %vm27_vm0, %v68_v5 }
   0x5   :  { %29 = vadd.xlane.f32.xlu0 %v28_v6 }
   0x6   :  { %9 = vsyncpa [#allocation4], 0  ;;  %v31_v8 = vsel %vm27_vm0, %v26_v4, 0.0  ;;  %v66_v9 = vld [vmem:[%s467_s1 + $0x60] sm:$0xff]  ;;  %v65_v10 = vld [vmem:[%s467_s1 + $0x58] sm:$0xff] }
   0x7   :  { %266 = vmatpush3.xpose.msk.msra.mxu0 %vm27_vm0, %v68_v5  ;;  %v64_v11 = vld [vmem:[%s467_s1 + $0x50] sm:$0xff]  ;;  %v63_v12 = vld [vmem:[%s467_s1 + $0x48] sm:$0xff]  ;;  %v62_v13 = vld [vmem:[%s467_s1 + $0x40] sm:$0xff] }
   0x8   :  { %267 = vmatprep.subr.msk.mxu0 %vm27_vm0, %v67_v7  ;;  %v61_v14 = vld [vmem:[%s467_s1 + $0x38] sm:$0xff]  ;;  %v60_v15 = vld [vmem:[%s467_s1 + $0x30] sm:$0xff]  ;;  %v59_v16 = vld [vmem:[%s467_s1 + $0x28] sm:$0xff] }
   0x9   :  { %32 = vadd.xlane.f32.xlu0 %v31_v8  ;;  %v58_v17 = vld [vmem:[%s467_s1 + $0x20] sm:$0xff]  ;;  %v57_v18 = vld [vmem:[%s467_s1 + $0x18] sm:$0xff]  ;;  %v56_v19 = vld [vmem:[%s467_s1 + $0x10] sm:$0xff] }
   0xa   :  { %v55_v20 = vld [vmem:[%s467_s1 + $0x8] sm:$0xff]  ;;  %v54_v21 = vld [vmem:[%s467_s1] sm:$0xff] }
   0xb   :  { %268 = vmatpush3.xpose.msk.msra.mxu0 %vm27_vm0, %v67_v7  ;;  %v225_v29 = vld [vmem:[%s468_s2] ss:$0 sm:$0xff]  ;;  %s327_s2 = smov [#allocation3]  }
   0xc   :  { %269 = vmatprep.subr.msk.mxu0 %vm27_vm0, %v66_v9  ;;  %v226_v37 = vld [vmem:[%s469_s3] ss:$0 sm:$0xff]  ;;  %s214_s26 = sshll.u32 %s327_s2, 4  ;;  %s215_s26 = int_to_ptr.vmem [resolvable:$true] %s214_s26 }
   0xd   :  { %s305_s27 = scalar_lea.vmem %s215_s26, 256  ;;  %p310_p1 = scmp.lt.s32.totalorder %s215_s26, %s215_s26 }
   0xe   :  { %p306_p0 = scmp.ne.s32.totalorder %s215_s26, %s305_s27  ;;  %p311_p2 = scmp.lt.s32.totalorder %s305_s27, %s305_s27 }
   0xf   :  { %270 = vmatpush3.xpose.msk.msra.mxu0 %vm27_vm0, %v66_v9 }
  0x10   :  { %271 = vmatprep.subr.msk.mxu0 %vm27_vm0, %v65_v10  ;;  %p312_p3 = por %p311_p2, %p310_p1 }
  0x12   :  { %p313_p4 = pnand %p312_p3, %p306_p0 }
  0x13   :  { %272 = vmatpush3.xpose.msk.msra.mxu0 %vm27_vm0, %v65_v10 }
  0x14   :  { %273 = vmatprep.subr.msk.mxu0 %vm27_vm0, %v64_v11 }
  0x17   :  { %274 = vmatpush3.xpose.msk.msra.mxu0 %vm27_vm0, %v64_v11 }
  0x18   :  { %275 = vmatprep.subr.msk.mxu0 %vm27_vm0, %v63_v12 }
  0x1b   :  { %276 = vmatpush3.xpose.msk.msra.mxu0 %vm27_vm0, %v63_v12 }
  0x1c   :  { %277 = vmatprep.subr.msk.mxu0 %vm27_vm0, %v62_v13 }
  0x1f   :  { %278 = vmatpush3.xpose.msk.msra.mxu0 %vm27_vm0, %v62_v13 }
  0x20   :  { %279 = vmatprep.subr.msk.mxu0 %vm27_vm0, %v61_v14 }
  0x23   :  { %280 = vmatpush3.xpose.msk.msra.mxu0 %vm27_vm0, %v61_v14 }
  0x24   :  { %281 = vmatprep.subr.msk.mxu0 %vm27_vm0, %v60_v15 }
  0x27   :  { %282 = vmatpush3.xpose.msk.msra.mxu0 %vm27_vm0, %v60_v15 }
  0x28   :  { %283 = vmatprep.subr.msk.mxu0 %vm27_vm0, %v59_v16 }
  0x2b   :  { %284 = vmatpush3.xpose.msk.msra.mxu0 %vm27_vm0, %v59_v16 }
  0x2c   :  { %285 = vmatprep.subr.msk.mxu0 %vm27_vm0, %v58_v17 }
  0x2f   :  { %286 = vmatpush3.xpose.msk.msra.mxu0 %vm27_vm0, %v58_v17 }
  0x30   :  { %287 = vmatprep.subr.msk.mxu0 %vm27_vm0, %v57_v18 }
  0x33   :  { %288 = vmatpush3.xpose.msk.msra.mxu0 %vm27_vm0, %v57_v18 }
  0x34   :  { %289 = vmatprep.subr.msk.mxu0 %vm27_vm0, %v56_v19 }
  0x37   :  { %290 = vmatpush3.xpose.msk.msra.mxu0 %vm27_vm0, %v56_v19 }
  0x38   :  { %291 = vmatprep.subr.msk.mxu0 %vm27_vm0, %v55_v20 }
  0x3b   :  { %292 = vmatpush3.xpose.msk.msra.mxu0 %vm27_vm0, %v55_v20 }
  0x3c   :  { %293 = vmatprep.subr.msk.mxu0 %vm27_vm0, %v54_v21 }
  0x3f   :  { %294 = vmatpush3.xpose.msk.msra.mxu0 %vm27_vm0, %v54_v21 }
  0x8e   :  { %v30_v22 = vpop.xlane.xlu0 %29 }
  0x8f   :  { %v34_v23 = vmul.f32 0.03125, %v30_v22 }
  0x91   :  { %v36_v24 = vadd.f32 1e-05, %v34_v23 }
  0x92   :  { %v33_v25 = vpop.xlane.xlu0 %32 }
  0x93   :  { %301 = vrsqrt.f32 %v36_v24  ;;  %v35_v26 = vmul.f32 0.03125, %v33_v25 }
  0x95   :  { %v37_v27 = vadd.f32 1e-05, %v35_v26 }
  0x97   :  { %303 = vrsqrt.f32 %v37_v27 }
  0xa0   :  { %v302_v28 = vpop.eup %301 }
  0xa1   :  { %v40_v30 = vmul.f32 %v302_v28, %v358_v0 }
  0xa3   :  { %v48_v31 = vmul.f32 %v225_v29, %v40_v30 }
  0xa4   :  { %v304_v32 = vpop.eup %303 }
  0xa5   :  { %50 = vst.msk [vmem:[#allocation2] sm:$0xff] %vm27_vm0, %v48_v31  ;;  %v41_v33 = vmul.f32 %v304_v32, %v363_v1 }
  0xa7   :  { %v49_v34 = vmul.f32 %v225_v29, %v41_v33 }
  0xa9   :  { %51 = vst.msk [vmem:[#allocation2 + $0x8] sm:$0xff] %vm27_vm0, %v49_v34 }
  0xac   :  { %v52_v35 = vld [vmem:[#allocation2] sm:$0xff] }
  0xad   :  { %295 = vmatprep.mubr.msk.f32.mxu0 %vm27_vm0, %v52_v35 }
  0xb0   :  { %v53_v36 = vld [vmem:[#allocation2 + $0x8] sm:$0xff] }
  0xb1   :  { %296 = vmatmul.mubr.msk.f32.vlgmr.msra.gmra.mxu0 %vm27_vm0, %v53_v36 }
 0x171   :  { %v297_v38 = vpop.f32.mrf.mxu0 }
 0x172   :  { %v204_v39 = vadd.f32 %v297_v38, %v226_v37 }
 0x173   :  { %v198_v40 = vpop.f32.mrf.mxu0 }
 0x174   :  { %208 = vst [vmem:[#allocation3 + $0x8] sm:$0xff] %v204_v39  ;;  %v199_v41 = vadd.f32 %v226_v37, %v198_v40 }
 0x176   :  { %207 = vst [vmem:[#allocation3] sm:$0xff] %v199_v41 }
 0x177   :  { %316 = shalt.err (!%p313_p4)
}
 0x178   :  { %s328_s28 = smov 128   ;;  %s329_s29 = smov 8  }
 0x179   :  { %220 = dma.vmem_to_hbm [thread:$0]  %s215_s26, 256, %s470_s4, [#allocation4], %s328_s28, %s328_s28, %s329_s29  }
 0x17a   :  { %325 = dma.done.wait [#allocation4], 256  }
 0x17b   :  { %326 = vsyncadd [#allocation4], 4294967040 }
 0x17c   :  { %224 = vsyncpa [#allocation4], 1 }

</bundles_post_ra>
